<compile_context>
chip_gen: v5e
topology: v5e:2x2
jax: 0.10.0
libtpu: 0.0.40
codegen_flags: <defaults>
</compile_context>

<pallas_src>
import functools
import math

import jax
import jax.numpy as jnp
from jax.experimental import pallas as pl
from jax.experimental.pallas import tpu as pltpu

_EPS = 1e-06
# clamp(sigmoid(x), eps, 1-eps) == sigmoid(clamp(x, -B, B)) with B = logit(1-eps)
_LOGIT_CLIP = float(math.log((1.0 - _EPS) / _EPS))


def _round_up(a, b):
    return (a + b - 1) // b * b


def _wbce_partial_kernel(x_ref, t_ref, out_ref, *, weight, smooth, ignore_index,
                         rows_full, rem, row_blk, need_mask):
    """Weighted BCE-with-logits partial sum for one lane-dense (row_blk, C) block."""
    x = x_ref[...].astype(jnp.float32)
    t = t_ref[...].astype(jnp.float32)

    if ignore_index is not None:
        # PyTorch semantics: zero both logits and targets at ignored positions;
        # they still contribute loss(x=0, t=smooth) and count in the mean.
        valid = t != jnp.float32(ignore_index)
        x = jnp.where(valid, x, 0.0)
        t = jnp.where(valid, t, 0.0)

    # eps clip on sigmoid expressed as a logit-space clamp, then stable softplus.
    x = jnp.clip(x, -_LOGIT_CLIP, _LOGIT_CLIP)
    t = jnp.clip(t, smooth, 1.0 - smooth)

    # softplus(x) = -log(1-p);  softplus(x) - x = -log(p)
    sp_pos = jnp.maximum(x, 0.0) + jnp.log1p(jnp.exp(-jnp.abs(x)))
    wt = weight * t
    # loss = wt*(sp_pos - x) + (1-t)*sp_pos  ==  sp_pos*(1 - t + wt) - wt*x
    loss = sp_pos * (1.0 - t + wt) - wt * x

    if need_mask:
        # Mask everything past the original N*D elements (pad / ragged block).
        # Keep this a SELECT: padded lanes may hold garbage -> NaN after exp.
        i = pl.program_id(0)
        row_ids = i * row_blk + jax.lax.broadcasted_iota(jnp.int32, loss.shape, 0)
        if rem == 0:
            inside = row_ids < rows_full
        else:
            col_ids = jax.lax.broadcasted_iota(jnp.int32, loss.shape, 1)
            inside = (row_ids < rows_full) | ((row_ids == rows_full) & (col_ids < rem))
        loss = jnp.where(inside, loss, 0.0)

    out_ref[0, 0] = jnp.sum(loss)


def wbce_with_logit_loss(output, target, *, weight=1.0, ignore_index=None,
                         reduction="mean", smooth=0.01):
    """JAX/Pallas equivalent of WBCEWithLogitLoss.forward."""
    assert reduction in ("none", "mean", "sum")
    assert output.shape[0] == target.shape[0], "output & target batch size don't match"
    weight = float(weight)

    n = output.shape[0]
    x2d = output.reshape(n, -1)
    t2d = target.reshape(n, -1)
    d = x2d.shape[1]
    dt = t2d.shape[1]
    assert dt in (1, d), "target is not broadcast-compatible with output"

    if reduction == "none":
        # TODO(synk): 'none' returns the elementwise (N, D) loss; there is no
        # reduction hot path to fuse, so it is computed in plain JAX.
        xf = x2d.astype(jnp.float32)
        tf = jnp.broadcast_to(t2d.astype(jnp.float32), xf.shape)
        if ignore_index is not None:
            valid = tf != jnp.float32(ignore_index)
            xf = jnp.where(valid, xf, 0.0)
            tf = jnp.where(valid, tf, 0.0)
        p = jnp.clip(jax.nn.sigmoid(xf), _EPS, 1.0 - _EPS)
        tf = jnp.clip(tf, smooth, 1.0 - smooth)
        return -weight * tf * jnp.log(p) - (1.0 - tf) * jnp.log(1.0 - p)

    total_elems = n * d

    # ---- lane-dense flat views (reshape of contiguous arrays is free) --------
    x_flat = x2d.reshape(total_elems)
    if dt == d:
        t_flat = t2d.reshape(total_elems)
    else:
        # dt == 1: materialize the per-row target across the feature dim so the
        # kernel sees the same lane-dense layout as the logits.
        # TODO(synk): costs one extra N*D HBM pass; in practice dt==1 only shows
        # up with tiny feature dims, where lane density dominates the trade-off.
        t_flat = jnp.broadcast_to(t2d, (n, d)).reshape(total_elems)

    # Pick lane width C (multiple of 128) that divides N*D so the reshape stays
    # free; otherwise pad once to a 128 multiple (rare: tiny / odd shapes).
    lane_c = 0
    for cand in (512, 256, 128):
        if total_elems % cand == 0:
            lane_c = cand
            break
    if lane_c == 0:
        lane_c = 128
        pad = (-total_elems) % lane_c
        x_flat = jnp.pad(x_flat, (0, pad))
        t_flat = jnp.pad(t_flat, (0, pad))
    n_rows = x_flat.shape[0] // lane_c
    x_v = x_flat.reshape(n_rows, lane_c)
    t_v = t_flat.reshape(n_rows, lane_c)

    # ---- block sizing: ~4 MiB of logits per block, sublane-packed rows -------
    isz_x = jnp.dtype(x_v.dtype).itemsize
    isz_t = jnp.dtype(t_v.dtype).itemsize
    sub = max(8, 32 // isz_x, 32 // isz_t)       # 8 f32 / 16 bf16 / 32 int8
    block_bytes = 4 << 20
    rows_by_bytes = max(sub, block_bytes // max(1, lane_c * isz_x))

    if n_rows <= sub:
        row_blk = n_rows                          # full extent (tiny input)
    else:
        row_blk = max(sub, (min(rows_by_bytes, n_rows) // sub) * sub)
        row_blk = min(row_blk, _round_up(n_rows, sub))
        # v7x guard: keep >= 2 grid steps so both TensorCores get work
        # (neutral on single-TC v5e/v6e).
        row_blk = min(row_blk, _round_up(pl.cdiv(n_rows, 2), sub))

    grid0 = pl.cdiv(n_rows, row_blk)
    need_mask = (grid0 * row_blk * lane_c != total_elems)
    rows_full = total_elems // lane_c
    rem = total_elems % lane_c

    kernel = functools.partial(
        _wbce_partial_kernel,
        weight=weight,
        smooth=float(smooth),
        ignore_index=None if ignore_index is None else float(ignore_index),
        rows_full=rows_full,
        rem=rem,
        row_blk=row_blk,
        need_mask=need_mask,
    )

    # vmem limit derived from the actual double-buffered footprint (+headroom),
    # capped for v7x's 64 MiB physical VMEM.
    footprint = 2 * row_blk * lane_c * (isz_x + isz_t)
    vmem_limit = int(min(48 << 20, footprint + (8 << 20)))

    partials = pl.pallas_call(
        kernel,
        out_shape=jax.ShapeDtypeStruct((grid0, 1), jnp.float32),
        grid_spec=pltpu.PrefetchScalarGridSpec(
            num_scalar_prefetch=0,
            grid=(grid0,),
            in_specs=[
                pl.BlockSpec((row_blk, lane_c), lambda i: (i, 0)),
                pl.BlockSpec((row_blk, lane_c), lambda i: (i, 0)),
            ],
            out_specs=pl.BlockSpec((1, 1), lambda i: (i, 0),
                                   memory_space=pltpu.SMEM),
        ),
        compiler_params=pltpu.CompilerParams(
            dimension_semantics=("parallel",),
            vmem_limit_bytes=vmem_limit),
    )(x_v, t_v)

    total = jnp.sum(partials)
    if reduction == "sum":
        return total
    return total / jnp.float32(total_elems)  # 'mean' over all N*D elements


def _reference(output, target, weight=1.0, smooth=0.01):
    """Plain-JAX transcription of the PyTorch forward (mean reduction)."""
    n = output.shape[0]
    o = output.reshape(n, -1).astype(jnp.float32)
    t = jnp.broadcast_to(target.reshape(n, -1).astype(jnp.float32), o.shape)
    p = jnp.clip(jax.nn.sigmoid(o), _EPS, 1.0 - _EPS)
    t = jnp.clip(t, smooth, 1.0 - smooth)
    loss = -weight * t * jnp.log(p) - (1.0 - t) * jnp.log(1.0 - p)
    return jnp.mean(loss)


if __name__ == "__main__":
    key = jax.random.PRNGKey(0)
    k1, k2, k3 = jax.random.split(key, 3)

    # Case 1 — matches the module's example: (32, 3) logits, (32,) targets of ones.
    # Exercises the dt==1 broadcast + pad-to-128 fallback path.
    inputs = jax.random.uniform(k1, (32, 3), dtype=jnp.float32)
    targets = jnp.ones((32,), dtype=jnp.float32)
    loss = jax.block_until_ready(
        wbce_with_logit_loss(inputs, targets, weight=3.0, reduction="mean"))
    ref = _reference(inputs, targets, weight=3.0)
    assert jnp.allclose(loss, ref, rtol=1e-5, atol=1e-5), (loss, ref)

    # Case 2 — segmentation-style [N, 1, h, w] with same-shaped targets.
    # Exercises the lane-dense free-reshape path with a 2-step parallel grid.
    x2 = jax.random.normal(k2, (8, 1, 32, 32), dtype=jnp.float32)
    t2 = (jax.random.uniform(k3, (8, 1, 32, 32)) > 0.5).astype(jnp.float32)
    loss2 = jax.block_until_ready(
        wbce_with_logit_loss(x2, t2, weight=3.0, reduction="mean"))
    ref2 = _reference(x2, t2, weight=3.0)
    assert jnp.allclose(loss2, ref2, rtol=1e-5, atol=1e-5), (loss2, ref2)

    print("KERNEL_OK")
</pallas_src>

<mosaic_0001>
module attributes {stable_mosaic.version = 11 : i64} {
  func.func @_wbce_partial_kernel(%arg0: i32, %arg1: memref<1x128xf32, #tpu.memory_space<vmem>>, %arg2: memref<1x128xf32, #tpu.memory_space<vmem>>, %arg3: memref<1x1xf32, #tpu.memory_space<smem>>) attributes {dimension_semantics = [#tpu.dimension_semantics<parallel>], iteration_bounds = array<i64: 1>, scalar_prefetch = 0 : i64, scratch_operands = 0 : i64, tpu.core_type = #tpu.core_type<tc>, window_params = [{transform_indices = @transform_0, window_bounds = array<i64: 1, 128>}, {transform_indices = @transform_1, window_bounds = array<i64: 1, 128>}, {transform_indices = @transform_2, window_bounds = array<i64: 1, 1>}]} {
    %c0 = arith.constant 0 : index
    %c0_0 = arith.constant 0 : index
    %0 = vector.load %arg1[%c0, %c0_0] : memref<1x128xf32, #tpu.memory_space<vmem>>, vector<1x128xf32>
    %c0_1 = arith.constant 0 : index
    %c0_2 = arith.constant 0 : index
    %1 = vector.load %arg2[%c0_1, %c0_2] : memref<1x128xf32, #tpu.memory_space<vmem>>, vector<1x128xf32>
    %cst = arith.constant -13.8155098 : f32
    %cst_3 = arith.constant 13.8155098 : f32
    %2 = vector.broadcast %cst : f32 to vector<1x128xf32>
    %3 = arith.maximumf %2, %0 : vector<1x128xf32>
    %4 = vector.broadcast %cst_3 : f32 to vector<1x128xf32>
    %5 = arith.minimumf %4, %3 : vector<1x128xf32>
    %cst_4 = arith.constant 0.00999999977 : f32
    %cst_5 = arith.constant 9.900000e-01 : f32
    %6 = vector.broadcast %cst_4 : f32 to vector<1x128xf32>
    %7 = arith.maximumf %6, %1 : vector<1x128xf32>
    %8 = vector.broadcast %cst_5 : f32 to vector<1x128xf32>
    %9 = arith.minimumf %8, %7 : vector<1x128xf32>
    %cst_6 = arith.constant 0.000000e+00 : f32
    %10 = vector.broadcast %cst_6 : f32 to vector<1x128xf32>
    %11 = arith.maximumf %5, %10 : vector<1x128xf32>
    %12 = math.absf %5 : vector<1x128xf32>
    %cst_7 = arith.constant 0.000000e+00 : f32
    %13 = vector.broadcast %cst_7 : f32 to vector<1x128xf32>
    %14 = arith.subf %13, %12 : vector<1x128xf32>
    %15 = math.exp %14 : vector<1x128xf32>
    %16 = math.log1p %15 : vector<1x128xf32>
    %17 = arith.addf %11, %16 : vector<1x128xf32>
    %cst_8 = arith.constant 3.000000e+00 : f32
    %18 = vector.broadcast %cst_8 : f32 to vector<1x128xf32>
    %19 = arith.mulf %18, %9 : vector<1x128xf32>
    %cst_9 = arith.constant 1.000000e+00 : f32
    %20 = vector.broadcast %cst_9 : f32 to vector<1x128xf32>
    %21 = arith.subf %20, %9 : vector<1x128xf32>
    %22 = arith.addf %21, %19 : vector<1x128xf32>
    %23 = arith.mulf %17, %22 : vector<1x128xf32>
    %24 = arith.mulf %19, %5 : vector<1x128xf32>
    %25 = arith.subf %23, %24 : vector<1x128xf32>
    %c1_i32 = arith.constant 1 : i32
    %26 = arith.muli %arg0, %c1_i32 : i32
    %27 = tpu.iota {dimensions = array<i32: 0>} : vector<1x128xi32>
    %28 = vector.broadcast %26 : i32 to vector<1x128xi32>
    %29 = arith.addi %28, %27 : vector<1x128xi32>
    %30 = tpu.iota {dimensions = array<i32: 1>} : vector<1x128xi32>
    %c0_i32 = arith.constant 0 : i32
    %31 = vector.broadcast %c0_i32 : i32 to vector<1x128xi32>
    %32 = arith.cmpi slt, %29, %31 : vector<1x128xi32>
    %c0_i32_10 = arith.constant 0 : i32
    %33 = vector.broadcast %c0_i32_10 : i32 to vector<1x128xi32>
    %34 = arith.cmpi eq, %29, %33 : vector<1x128xi32>
    %c96_i32 = arith.constant 96 : i32
    %35 = vector.broadcast %c96_i32 : i32 to vector<1x128xi32>
    %36 = arith.cmpi slt, %30, %35 : vector<1x128xi32>
    %37 = arith.andi %34, %36 : vector<1x128xi1>
    %38 = arith.ori %32, %37 : vector<1x128xi1>
    %cst_11 = arith.constant 0.000000e+00 : f32
    %39 = vector.broadcast %cst_11 : f32 to vector<1x128xf32>
    %40 = arith.select %38, %25, %39 : vector<1x128xi1>, vector<1x128xf32>
    %41 = vector.shape_cast %40 : vector<1x128xf32> to vector<1x1x128xf32>
    %cst_12 = arith.constant dense<0.000000e+00> : vector<1xf32>
    %42 = vector.multi_reduction <add>, %41, %cst_12 [1, 2] : vector<1x1x128xf32> to vector<1xf32>
    %43 = vector.shape_cast %42 : vector<1xf32> to vector<1x1x1xf32>
    %44 = vector.extract %43[0, 0, 0] : f32 from vector<1x1x1xf32>
    %c0_13 = arith.constant 0 : index
    %c0_14 = arith.constant 0 : index
    %45 = memref.load %arg3[%c0_13, %c0_14] : memref<1x1xf32, #tpu.memory_space<smem>>
    memref.store %44, %arg3[%c0_13, %c0_14] : memref<1x1xf32, #tpu.memory_space<smem>>
    return
  }
  func.func @transform_0(%arg0: i32) -> (i32, i32) {
    %c0_i32 = arith.constant 0 : i32
    %c0_i32_0 = arith.constant 0 : i32
    return %arg0, %c0_i32 : i32, i32
  }
  func.func @transform_1(%arg0: i32) -> (i32, i32) {
    %c0_i32 = arith.constant 0 : i32
    %c0_i32_0 = arith.constant 0 : i32
    return %arg0, %c0_i32 : i32, i32
  }
  func.func @transform_2(%arg0: i32) -> (i32, i32) {
    %c0_i32 = arith.constant 0 : i32
    %c0_i32_0 = arith.constant 0 : i32
    return %arg0, %c0_i32 : i32, i32
  }
}

</mosaic_0001>

<bundles_post_ra>
// kernel: tpu_custom_call.1
= control target key start
LH: loop header
LB: loop body
LE: loop exit
PB: predicated region body
PF: predicated region fallthrough
CT: control target
= control target key end

     0   :  { %7 = vsyncpa [#allocation3], 0  ;;  %s212_s0 = inlined_call_operand.hbm [shape: f32[1,128], index: 0, kind: input, shape index: {}]   ;;  %s213_s1 = inlined_call_operand.hbm [shape: f32[1,128], index: 1, kind: input, shape index: {}]   ;;  %s214_s2 = inlined_call_operand.hbm [shape: f32[1,1], index: 2, kind: output, shape index: {}]  }
   0x1   :  { %8 = vsyncpa [#allocation6], 0 }
   0x2   :  { %9 = vsyncpa [#allocation4], 0  ;;  %s15_s11 = sshll.u32 %s212_s0, 4  ;;  %s185_s12 = smov [#allocation2]   ;;  %s16_s11 = int_to_ptr.hbm [resolvable:$true] %s15_s11 }
   0x3   :  { %s17_s13 = sshll.u32 %s185_s12, 4  ;;  %s26_s16 = sshll.u32 %s213_s1, 4  ;;  %s18_s13 = int_to_ptr.vmem [resolvable:$true] %s17_s13  ;;  %s27_s16 = int_to_ptr.hbm [resolvable:$true] %s26_s16 }
   0x4   :  { %20 = dma.hbm_to_vmem [thread:$0]  %s16_s11, 16, %s18_s13, [#allocation3]  }
   0x5   :  { %s186_s17 = smov [#allocation5]  }
   0x6   :  { %s28_s18 = sshll.u32 %s186_s17, 4  ;;  %s29_s18 = int_to_ptr.vmem [resolvable:$true] %s28_s18 }
   0x7   :  { %31 = dma.hbm_to_vmem [thread:$0]  %s27_s16, 16, %s29_s18, [#allocation6]  }
   0x8   :  { %179 = dma.done.wait [#allocation3], 16  }
   0x9   :  { %180 = vsyncadd [#allocation3], 4294967280 }
   0xa   :  { %181 = dma.done.wait [#allocation6], 16  }
   0xb   :  { %182 = vsyncadd [#allocation6], 4294967280  ;;  %v40_v0 = vld [vmem:[#allocation2] sm:$0x1]  ;;  %v41_v5 = vld [vmem:[#allocation5] sm:$0x1]  ;;  %v67_v13 = vlaneseq }
   0xc   :  { %v109_v1 = vclamps-f32 %v40_v0, 13.81551  ;;  %v44_v6 = vmax.f32 %v41_v5, 0.01  ;;  %vm79_vm4 = vcmask 1040384   ;;  %s97_s19 = sshll.u32 %s214_s2, 4  ;;  %s98_s19 = int_to_ptr.hbm [resolvable:$true] %s97_s19 }
   0xd   :  { %v68_v19 = vshrl.u32 %v67_v13, 7  ;;  %v72_v20 = vand.u32 127, %v67_v13  ;;  %s187_s21 = smov [#allocation7]  }
   0xe   :  { %v47_v2 = vand.u32 2147483647, %v109_v1  ;;  %v45_v10 = vmin.f32 %v44_v6, 0.99  ;;  %v46_v18 = vmax.f32 %v109_v1, 0.0 }
   0xf   :  { %vm74_vm1 = vcmp.eq.s32.totalorder %v68_v19, 0  ;;  %vm75_vm2 = vcmp.lt.s32.totalorder %v72_v20, 96 }
  0x10   :  { %v48_v3 = vsub.f32 0.0, %v47_v2  ;;  %v61_v14 = vmul.f32 3.0, %v45_v10  ;;  %v62_v15 = vsub.f32 1.0, %v45_v10  ;;  %vm76_vm3 = vmand %vm74_vm1, %vm75_vm2 }
  0x12   :  { %v49_v4 = vmul.f32 1.442695, %v48_v3  ;;  %v63_v22 = vadd.f32 %v62_v15, %v61_v14  ;;  %v65_v25 = vmul.f32 %v109_v1, %v61_v14 }
  0x14   :  { %115 = vpow2.f32 %v49_v4 }
  0x1a   :  { %v116_v7 = vpop.eup %115 }
  0x1b   :  { %v51_v8 = vadd.f32 1.0, %v116_v7  ;;  %v54_v9 = vmul.f32 -0.5, %v116_v7  ;;  %v57_v12 = vand.u32 2147483647, %v116_v7 }
  0x1d   :  { %117 = vlog2.f32 %v51_v8  ;;  %v55_v11 = vadd.f32 1.0, %v54_v9  ;;  %vm58_vm0 = vcmp.lt.f32.partialorder %v57_v12, 0.0004427343 }
  0x1f   :  { %v56_v16 = vmul.f32 %v116_v7, %v55_v11 }
  0x23   :  { %v118_v17 = vpop.eup %117 }
  0x24   :  { %v53_v21 = vmul.f32 0.6931472, %v118_v17 }
  0x26   :  { %v59_v23 = vsel %vm58_vm0, %v56_v16, %v53_v21 }
  0x27   :  { %v60_v24 = vadd.f32 %v59_v23, %v46_v18 }
  0x29   :  { %v64_v26 = vmul.f32 %v63_v22, %v60_v24 }
  0x2b   :  { %v66_v27 = vsub.f32 %v64_v26, %v65_v25 }
  0x2d   :  { %v78_v28 = vsel %vm76_vm3, %v66_v27, 0.0 }
  0x2e   :  { %v80_v29 = vsel %vm79_vm4, %v78_v28, 0.0 }
  0x2f   :  { %81 = vadd.xlane.f32.xlu0 %v80_v29 }
  0xa2   :  { %v82_v30 = vpop.xlane.xlu0 %81 }
  0xa3   :  { %v83_v31 = vrot.slane %v82_v30, 4 }
  0xa5   :  { %v84_v32 = vadd.f32 %v83_v31, %v82_v30 }
  0xa7   :  { %v85_v33 = vrot.slane %v84_v32, 2 }
  0xa9   :  { %v86_v34 = vadd.f32 %v85_v33, %v84_v32 }
  0xab   :  { %v87_v35 = vrot.slane %v86_v34, 1 }
  0xad   :  { %v88_v36 = vadd.f32 %v87_v35, %v86_v34 }
  0xaf   :  { %110 = vpush %v88_v36 }
  0xe0   :  { %s111_s20 = spop %110 }
  0xe1   :  { %91 = sst [smem:[#allocation7]] %s111_s20 }
  0xe2   :  { %100 = dma.smem_to_hbm %s187_s21, 16, %s98_s19, [#allocation4]  }
  0xe3   :  { %183 = dma.done.wait [#allocation4], 16  }
  0xe4   :  { %184 = vsyncadd [#allocation4], 4294967280 }
  0xe5   :  { %105 = sfence }
  0xe6   :  { %106 = vsyncpa [#allocation3], 1 }
  0xe7   :  { %107 = vsyncpa [#allocation6], 1 }
  0xe8   :  { %108 = vsyncpa [#allocation4], 1 }

</bundles_post_ra>
